<compile_context>
chip_gen: v6e
topology: v6e:2x2x1
jax: 0.10.0
libtpu: 0.0.40
codegen_flags: <defaults>
</compile_context>

<pallas_src>
import functools

import jax
import jax.numpy as jnp
from jax import lax
from jax.experimental import pallas as pl
from jax.experimental.pallas import tpu as pltpu

# ---- problem sizes (from the PyTorch module) ----
D_IN = 3      # nn.Linear(3, 50)
HID = 50      # hidden width
D_OUT = 3     # nn.Linear(50, 3)
NUM_VAR = 3   # args.num_var (<= HID); dCBF edits the first num_var columns of W2

# ---- padded (TPU tile) sizes ----
H_PAD = 64       # hidden 50 -> 64 lanes
OUT_PAD = 128    # output 3 -> 128 lanes (lane-dense output tile)
ROW_PAD = 8      # sublane padding
TRAJ_TILE = 8    # trajectories per sublane group (one per sublane row)

_F32 = jnp.float32

_VMEM_SPEC = pl.BlockSpec(memory_space=pltpu.MemorySpace.VMEM)
_SMEM_SPEC = pl.BlockSpec(memory_space=pltpu.MemorySpace.SMEM)


# -----------------------------------------------------------------------------
# In-kernel constant masks (built from iota: no extra operands / DMAs)
# -----------------------------------------------------------------------------
def _c_lane():
    """c = (-0.5, -0.5, 1, 0, ...) over output lanes (CBF direction)."""
    out_lane = lax.broadcasted_iota(jnp.int32, (1, OUT_PAD), 1)
    return jnp.where(out_lane == 2, 1.0,
                     jnp.where(out_lane < 2, -0.5, 0.0)).astype(_F32)


def _num_var_mask():
    """(1, H_PAD) mask of hidden lanes < num_var."""
    hid_lane = lax.broadcasted_iota(jnp.int32, (1, H_PAD), 1)
    return (hid_lane < NUM_VAR).astype(_F32)


# -----------------------------------------------------------------------------
# Single forward (exact ODEFunc.forward(t, y) semantics, batch = 1)
# -----------------------------------------------------------------------------
def _forward_kernel(y_ref, w1t_ref, b1_ref, w2t_ref, b2_ref, out_ref):
    # y_ref: SMEM (3,) scalars.  Everything else is a small resident VMEM tile.
    y0 = y_ref[0]
    y1 = y_ref[1]
    y2 = y_ref[2]

    # Layer 1 on the VPU/EUP: K=3 does not justify an MXU pass.
    # hidden[h] = tanh(sum_i y_i * W1[h, i] + b1[h]); padded lanes stay exactly 0.
    hidden = jnp.tanh(y0 * w1t_ref[0:1, :]
                      + y1 * w1t_ref[1:2, :]
                      + y2 * w1t_ref[2:3, :]
                      + b1_ref[...])                                 # (1, H_PAD)

    # Constant masks generated in-kernel (fewer startup DMAs).
    c_lane = _c_lane()                                               # (1, OUT_PAD)
    row = lax.broadcasted_iota(jnp.int32, (ROW_PAD, H_PAD), 0)
    hid_lane = lax.broadcasted_iota(jnp.int32, (ROW_PAD, H_PAD), 1)
    pack = jnp.where(row == 0, 1.0,
                     jnp.where((row == 1) & (hid_lane < NUM_VAR), 1.0, 0.0)
                     ).astype(_F32)                                  # (8, H_PAD)

    # ONE MXU matmul for everything that needs W2^T:
    #   row 0 of `packed` = hidden, row 1 = hm := hidden masked to lanes < num_var.
    packed = pack * hidden                                           # (8, H_PAD)
    res = jnp.dot(packed, w2t_ref[...],
                  preferred_element_type=jnp.float32)                # (8, OUT_PAD)

    b2 = b2_ref[...]                                                 # (1, OUT_PAD)

    # bias_rt = net(y) with W2 columns 0..num_var-1 zeroed = (hidden - hm)@W2^T + b2
    bias_rt = res[0:1, :] - res[1:2, :] + b2                         # (1, OUT_PAD)

    # CBF scalars:  b = 0.5*(y0+y1) - y2,  Lfb = 0.5*(br0+br1) - br2,  h = Lfb + b
    lfb = jnp.sum(bias_rt * (-c_lane))
    b_s = 0.5 * (y0 + y1) - y2
    h_s = lfb + b_s

    # QP (identity Q, single halfspace):
    #   x*[3i+j] = W2^T[i, j] (i < num_var),  g[3i+j] = c_j * hidden[i]
    #   g.x* = sum_j c_j * (hm @ W2^T)[j],   |g|^2 = |c|^2 * sum_i hm_i^2
    gTx = jnp.sum(res[1:2, :] * c_lane)
    hm = packed[1:2, :]
    s_hm2 = jnp.sum(hm * hm)
    gTg = 1.5 * s_hm2                                                # |c|^2 = 1.5

    violated = jnp.logical_and(gTx > h_s, gTg > 0.0)
    alpha = jnp.where(violated, (h_s - gTx) / jnp.maximum(gTg, 1e-12), 0.0)

    # W2^T_new = W2^T + alpha * outer(hm, c)
    #   => out = hidden @ W2^T + b2 + alpha * (hidden . hm) * c,  hidden.hm == s_hm2
    out_ref[...] = res + b2 + (alpha * s_hm2) * c_lane   # row 0 is the real output


def make_odefunc_params(w1, b1, w2, b2):
    """Pad/transpose the module parameters ONCE into TPU-friendly resident tiles."""
    w1t = jnp.zeros((ROW_PAD, H_PAD), _F32).at[:D_IN, :HID].set(
        jnp.asarray(w1, _F32).T)
    b1p = jnp.zeros((1, H_PAD), _F32).at[0, :HID].set(jnp.asarray(b1, _F32))
    w2t = jnp.zeros((H_PAD, OUT_PAD), _F32).at[:HID, :D_OUT].set(
        jnp.asarray(w2, _F32).T)
    b2p = jnp.zeros((1, OUT_PAD), _F32).at[0, :D_OUT].set(jnp.asarray(b2, _F32))
    return w1t, b1p, w2t, b2p


@jax.jit
def odefunc_forward(t, y, w1t, b1p, w2t, b2p):
    """Pallas forward of ODEFunc.forward(t, y); t is unused (as in the module)."""
    del t
    y_flat = jnp.asarray(y, _F32).reshape(-1)[:D_IN]       # (3,) -> SMEM scalars
    out = pl.pallas_call(
        _forward_kernel,
        out_shape=jax.ShapeDtypeStruct((ROW_PAD, OUT_PAD), _F32),
        in_specs=[_SMEM_SPEC, _VMEM_SPEC, _VMEM_SPEC, _VMEM_SPEC, _VMEM_SPEC],
        out_specs=_VMEM_SPEC,
    )(y_flat, w1t, b1p, w2t, b2p)
    return out[:1, :D_OUT]


# -----------------------------------------------------------------------------
# Fused, sublane-batched explicit-Euler integration (the real entry point)
# -----------------------------------------------------------------------------
def _fused_euler_kernel(y_ref, dt_ref, w1t_ref, b1_ref, w2t_ref, b2_ref,
                        w2c_ref, out_ref, *, n_steps):
    """n_steps of y <- y + dt*ODEFunc(y) for 8 trajectories (one per sublane row)."""
    dt = dt_ref[0]
    w1t = w1t_ref[...]        # (OUT_PAD, H_PAD): y enters as lanes, K = OUT_PAD
    b1 = b1_ref[...]          # (1, H_PAD)
    w2t = w2t_ref[...]        # (H_PAD, OUT_PAD)
    b2 = b2_ref[...]          # (1, OUT_PAD)
    w2c = w2c_ref[...]        # (1, H_PAD): (W2^T @ c), precomputed once on host

    c_lane = _c_lane()        # (1, OUT_PAD)
    neg_c = -c_lane
    nv_mask = _num_var_mask() # (1, H_PAD)

    def step(_, y_mat):       # y_mat: (TRAJ_TILE, OUT_PAD); lanes >= 3 stay exactly 0
        hidden = jnp.tanh(
            jnp.dot(y_mat, w1t, preferred_element_type=jnp.float32) + b1)  # (8,H_PAD)
        net_out = jnp.dot(hidden, w2t,
                          preferred_element_type=jnp.float32) + b2         # (8,OUT_PAD)
        hm = hidden * nv_mask                                              # (8,H_PAD)

        # Per-row CBF scalars (lane reductions; rows are independent trajectories):
        #   gTx = g.x*  = sum_i hm_i * (W2^T c)_i
        #   Lfb = sum((net(y) - hm@W2^T) * (-c)) = sum(net_out * -c) + gTx
        #   b   = 0.5*(y0+y1) - y2 = sum(y * -c)          (padded lanes are 0)
        gTx = jnp.sum(hm * w2c, axis=-1, keepdims=True)                    # (8,1)
        lfb = jnp.sum(net_out * neg_c, axis=-1, keepdims=True) + gTx
        b_s = jnp.sum(y_mat * neg_c, axis=-1, keepdims=True)
        h_s = lfb + b_s

        s_hm2 = jnp.sum(hm * hm, axis=-1, keepdims=True)
        gTg = 1.5 * s_hm2                                                  # |c|^2=1.5
        alpha = jnp.where(
            jnp.logical_and(gTx > h_s, gTg > 0.0),
            (h_s - gTx) * pl.reciprocal(jnp.maximum(gTg, 1e-12), approx=False),
            0.0)                                                           # (8,1)

        f = net_out + (alpha * s_hm2) * c_lane      # dy/dt; lanes >= 3 stay 0
        return y_mat + dt * f

    # Fully unroll modest step counts so the scheduler sees across iterations.
    unroll = True if n_steps <= 128 else False
    out_ref[...] = lax.fori_loop(0, n_steps, step, y_ref[...], unroll=unroll)


def make_fused_params(w1, b1, w2, b2):
    """Resident tiles for the fused path (built once per parameter set)."""
    _, b1p, w2t, b2p = make_odefunc_params(w1, b1, w2, b2)
    w1t_wide = jnp.zeros((OUT_PAD, H_PAD), _F32).at[:D_IN, :HID].set(
        jnp.asarray(w1, _F32).T)
    w2f = jnp.asarray(w2, _F32)
    w2c_vals = -0.5 * w2f[0, :] - 0.5 * w2f[1, :] + w2f[2, :]      # (HID,) = W2^T @ c
    w2c = jnp.zeros((1, H_PAD), _F32).at[0, :HID].set(w2c_vals)
    return w1t_wide, b1p, w2t, b2p, w2c


@functools.partial(jax.jit, static_argnames=("n_steps",))
def odefunc_fused_euler(y0_batch, dt, w1t_wide, b1p, w2t, b2p, w2c, *, n_steps):
    """Whole explicit-Euler solve for a batch of trajectories in ONE pallas_call.

    y0_batch: (n_traj, 3) with n_traj a multiple of 8.  Each group of 8
    trajectories is one grid step; groups are marked "parallel" so v7x can
    split them across its two TensorCores (weights are replicated — ~70 KiB).
    """
    y0_batch = jnp.asarray(y0_batch, _F32)
    n_traj = y0_batch.shape[0]
    assert n_traj % TRAJ_TILE == 0, "n_traj must be a multiple of 8"
    n_groups = n_traj // TRAJ_TILE

    y0_pad = jnp.zeros((n_traj, OUT_PAD), _F32).at[:, :D_IN].set(
        y0_batch[:, :D_IN])
    dt_arr = jnp.reshape(jnp.asarray(dt, _F32), (1,))

    out = pl.pallas_call(
        functools.partial(_fused_euler_kernel, n_steps=n_steps),
        out_shape=jax.ShapeDtypeStruct((n_traj, OUT_PAD), _F32),
        grid=(n_groups,),
        in_specs=[pl.BlockSpec((TRAJ_TILE, OUT_PAD), lambda g: (g, 0)),
                  _SMEM_SPEC,      # dt
                  _VMEM_SPEC,      # W1^T (wide)
                  _VMEM_SPEC,      # b1
                  _VMEM_SPEC,      # W2^T
                  _VMEM_SPEC,      # b2
                  _VMEM_SPEC],     # W2^T @ c
        out_specs=pl.BlockSpec((TRAJ_TILE, OUT_PAD), lambda g: (g, 0)),
        compiler_params=pltpu.CompilerParams(
            dimension_semantics=("parallel",)),
    )(y0_pad, dt_arr, w1t_wide, b1p, w2t, b2p, w2c)
    return out[:, :D_OUT]


# -----------------------------------------------------------------------------
# Pure-JAX reference (same math as the PyTorch module's dCBF forward)
# -----------------------------------------------------------------------------
def odefunc_reference(y, w1, b1, w2, b2):
    hidden = jnp.tanh(y @ w1.T + b1)                                 # (1, 50)
    mask = (jnp.arange(HID) >= NUM_VAR).astype(_F32)
    bias_rt = (hidden * mask) @ w2.T + b2                            # (1, 3)
    b_s = 0.5 * (y[0, 0] + y[0, 1]) - y[0, 2]
    lfb = 0.5 * (bias_rt[0, 0] + bias_rt[0, 1]) - bias_rt[0, 2]
    h_s = lfb + b_s
    c = jnp.array([-0.5, -0.5, 1.0], _F32)
    hm = hidden[0, :NUM_VAR]
    g = jnp.reshape(hm[:, None] * c[None, :], (-1,))                 # (3*NUM_VAR,)
    xstar = jnp.reshape(w2[:, :NUM_VAR].T, (-1,))
    gTx = g @ xstar
    gTg = g @ g
    alpha = jnp.where((gTx > h_s) & (gTg > 0.0),
                      (h_s - gTx) / jnp.maximum(gTg, 1e-12), 0.0)
    x = xstar + alpha * g
    new_w = jnp.reshape(x, (NUM_VAR, 3)).T
    w2n = w2.at[:, :NUM_VAR].set(new_w)
    return hidden @ w2n.T + b2


if __name__ == "__main__":
    key = jax.random.PRNGKey(0)
    k_y, k_w1, k_w2, k_b1, k_b2, k_batch = jax.random.split(key, 6)

    # Module params: Linear weights ~ N(0, 0.1), biases = 0 (per __init__).
    w1 = 0.1 * jax.random.normal(k_w1, (HID, D_IN), _F32)
    b1 = jnp.zeros((HID,), _F32)
    w2 = 0.1 * jax.random.normal(k_w2, (D_OUT, HID), _F32)
    b2 = jnp.zeros((D_OUT,), _F32)

    y = jax.random.normal(k_y, (1, D_IN), _F32)
    t = jnp.float32(0.0)

    # 1) single forward (matches ODEFunc.forward); weights padded once up front.
    w1t, b1p, w2t, b2p = make_odefunc_params(w1, b1, w2, b2)
    out = jax.block_until_ready(odefunc_forward(t, y, w1t, b1p, w2t, b2p))
    ref = jax.block_until_ready(odefunc_reference(y, w1, b1, w2, b2))
    assert out.shape == (1, D_OUT)
    assert jnp.allclose(out, ref, atol=1e-4, rtol=1e-4), (out, ref)

    # 1b) same check with non-zero biases (exercises padded-lane handling).
    b1n = 0.1 * jax.random.normal(k_b1, (HID,), _F32)
    b2n = 0.1 * jax.random.normal(k_b2, (D_OUT,), _F32)
    w1tn, b1pn, w2tn, b2pn = make_odefunc_params(w1, b1n, w2, b2n)
    out_n = jax.block_until_ready(odefunc_forward(t, y, w1tn, b1pn, w2tn, b2pn))
    ref_n = jax.block_until_ready(odefunc_reference(y, w1, b1n, w2, b2n))
    assert jnp.allclose(out_n, ref_n, atol=1e-4, rtol=1e-4), (out_n, ref_n)

    # 2) fused, sublane-batched explicit-Euler solve: 16 trajectories
    #    (2 groups of 8 -> 2 "parallel" grid steps), one pallas_call total.
    n_steps = 16
    dt = 0.05
    n_traj = 2 * TRAJ_TILE
    y0_batch = jax.random.normal(k_batch, (n_traj, D_IN), _F32)
    fused_params = make_fused_params(w1, b1n, w2, b2n)
    y_fused = jax.block_until_ready(
        odefunc_fused_euler(y0_batch, dt, *fused_params, n_steps=n_steps))
    assert y_fused.shape == (n_traj, D_OUT)

    @jax.jit
    def reference_euler(yb):
        def one(row):
            return odefunc_reference(row[None, :], w1, b1n, w2, b2n)[0]

        def body(_, cur):
            return cur + dt * jax.vmap(one)(cur)

        return lax.fori_loop(0, n_steps, body, yb)

    y_ref = jax.block_until_ready(reference_euler(y0_batch))
    assert jnp.allclose(y_fused, y_ref, atol=1e-3, rtol=1e-3), (y_fused, y_ref)

    print("KERNEL_OK")
</pallas_src>

<mosaic_0001>
module attributes {stable_mosaic.version = 11 : i64} {
  func.func @_forward_kernel(%arg0: memref<3xf32, #tpu.memory_space<smem>>, %arg1: memref<8x64xf32, #tpu.memory_space<vmem>>, %arg2: memref<1x64xf32, #tpu.memory_space<vmem>>, %arg3: memref<64x128xf32, #tpu.memory_space<vmem>>, %arg4: memref<1x128xf32, #tpu.memory_space<vmem>>, %arg5: memref<8x128xf32, #tpu.memory_space<vmem>>) attributes {dimension_semantics = [], scalar_prefetch = 0 : i64, scratch_operands = 0 : i64, tpu.core_type = #tpu.core_type<tc>} {
    %c0 = arith.constant 0 : index
    %0 = memref.load %arg0[%c0] : memref<3xf32, #tpu.memory_space<smem>>
    %c1 = arith.constant 1 : index
    %1 = memref.load %arg0[%c1] : memref<3xf32, #tpu.memory_space<smem>>
    %c2 = arith.constant 2 : index
    %2 = memref.load %arg0[%c2] : memref<3xf32, #tpu.memory_space<smem>>
    %c0_0 = arith.constant 0 : index
    %c0_1 = arith.constant 0 : index
    %3 = vector.load %arg1[%c0_0, %c0_1] : memref<8x64xf32, #tpu.memory_space<vmem>>, vector<1x64xf32>
    %4 = vector.broadcast %0 : f32 to vector<1x64xf32>
    %5 = arith.mulf %4, %3 : vector<1x64xf32>
    %c1_2 = arith.constant 1 : index
    %c0_3 = arith.constant 0 : index
    %6 = vector.load %arg1[%c1_2, %c0_3] : memref<8x64xf32, #tpu.memory_space<vmem>>, vector<1x64xf32>
    %7 = vector.broadcast %1 : f32 to vector<1x64xf32>
    %8 = arith.mulf %7, %6 : vector<1x64xf32>
    %9 = arith.addf %5, %8 : vector<1x64xf32>
    %c2_4 = arith.constant 2 : index
    %c0_5 = arith.constant 0 : index
    %10 = vector.load %arg1[%c2_4, %c0_5] : memref<8x64xf32, #tpu.memory_space<vmem>>, vector<1x64xf32>
    %11 = vector.broadcast %2 : f32 to vector<1x64xf32>
    %12 = arith.mulf %11, %10 : vector<1x64xf32>
    %13 = arith.addf %9, %12 : vector<1x64xf32>
    %c0_6 = arith.constant 0 : index
    %c0_7 = arith.constant 0 : index
    %14 = vector.load %arg2[%c0_6, %c0_7] : memref<1x64xf32, #tpu.memory_space<vmem>>, vector<1x64xf32>
    %15 = arith.addf %13, %14 : vector<1x64xf32>
    %16 = math.tanh %15 : vector<1x64xf32>
    %17 = tpu.iota {dimensions = array<i32: 1>} : vector<1x128xi32>
    %c2_i32 = arith.constant 2 : i32
    %18 = vector.broadcast %c2_i32 : i32 to vector<1x128xi32>
    %19 = arith.cmpi eq, %17, %18 : vector<1x128xi32>
    %c2_i32_8 = arith.constant 2 : i32
    %20 = vector.broadcast %c2_i32_8 : i32 to vector<1x128xi32>
    %21 = arith.cmpi slt, %17, %20 : vector<1x128xi32>
    %cst = arith.constant -5.000000e-01 : f32
    %cst_9 = arith.constant 0.000000e+00 : f32
    %22 = vector.broadcast %cst : f32 to vector<1x128xf32>
    %23 = vector.broadcast %cst_9 : f32 to vector<1x128xf32>
    %24 = arith.select %21, %22, %23 : vector<1x128xi1>, vector<1x128xf32>
    %cst_10 = arith.constant 1.000000e+00 : f32
    %25 = vector.broadcast %cst_10 : f32 to vector<1x128xf32>
    %26 = arith.select %19, %25, %24 : vector<1x128xi1>, vector<1x128xf32>
    %27 = tpu.iota {dimensions = array<i32: 0>} : vector<8x64xi32>
    %28 = tpu.iota {dimensions = array<i32: 1>} : vector<8x64xi32>
    %c0_i32 = arith.constant 0 : i32
    %29 = vector.broadcast %c0_i32 : i32 to vector<8x64xi32>
    %30 = arith.cmpi eq, %27, %29 : vector<8x64xi32>
    %c1_i32 = arith.constant 1 : i32
    %31 = vector.broadcast %c1_i32 : i32 to vector<8x64xi32>
    %32 = arith.cmpi eq, %27, %31 : vector<8x64xi32>
    %c3_i32 = arith.constant 3 : i32
    %33 = vector.broadcast %c3_i32 : i32 to vector<8x64xi32>
    %34 = arith.cmpi slt, %28, %33 : vector<8x64xi32>
    %35 = arith.andi %32, %34 : vector<8x64xi1>
    %cst_11 = arith.constant 1.000000e+00 : f32
    %cst_12 = arith.constant 0.000000e+00 : f32
    %36 = vector.broadcast %cst_11 : f32 to vector<8x64xf32>
    %37 = vector.broadcast %cst_12 : f32 to vector<8x64xf32>
    %38 = arith.select %35, %36, %37 : vector<8x64xi1>, vector<8x64xf32>
    %cst_13 = arith.constant 1.000000e+00 : f32
    %39 = vector.broadcast %cst_13 : f32 to vector<8x64xf32>
    %40 = arith.select %30, %39, %38 : vector<8x64xi1>, vector<8x64xf32>
    %41 = vector.broadcast %16 : vector<1x64xf32> to vector<8x64xf32>
    %42 = arith.mulf %40, %41 : vector<8x64xf32>
    %c0_14 = arith.constant 0 : index
    %c0_15 = arith.constant 0 : index
    %43 = vector.load %arg3[%c0_14, %c0_15] : memref<64x128xf32, #tpu.memory_space<vmem>>, vector<64x128xf32>
    %cst_16 = arith.constant dense<0.000000e+00> : vector<8x128xf32>
    %44 = tpu.matmul %42, %43, %cst_16 {dimension_numbers = #tpu.dot_dimension_numbers<[1], [0], [0], [1], [0, 0, 1, 1], [], []>} : vector<8x64xf32>, vector<64x128xf32>, vector<8x128xf32> -> vector<8x128xf32>
    %c0_17 = arith.constant 0 : index
    %c0_18 = arith.constant 0 : index
    %45 = vector.load %arg4[%c0_17, %c0_18] : memref<1x128xf32, #tpu.memory_space<vmem>>, vector<1x128xf32>
    %46 = vector.extract_strided_slice %44 {offsets = [0, 0], sizes = [1, 128], strides = [1, 1]} : vector<8x128xf32> to vector<1x128xf32>
    %47 = vector.extract_strided_slice %44 {offsets = [1, 0], sizes = [1, 128], strides = [1, 1]} : vector<8x128xf32> to vector<1x128xf32>
    %48 = arith.subf %46, %47 : vector<1x128xf32>
    %49 = arith.addf %48, %45 : vector<1x128xf32>
    %cst_19 = arith.constant 0.000000e+00 : f32
    %50 = vector.broadcast %cst_19 : f32 to vector<1x128xf32>
    %51 = arith.subf %50, %26 : vector<1x128xf32>
    %52 = arith.mulf %49, %51 : vector<1x128xf32>
    %53 = vector.shape_cast %52 : vector<1x128xf32> to vector<1x1x128xf32>
    %cst_20 = arith.constant dense<0.000000e+00> : vector<1xf32>
    %54 = vector.multi_reduction <add>, %53, %cst_20 [1, 2] : vector<1x1x128xf32> to vector<1xf32>
    %55 = vector.shape_cast %54 : vector<1xf32> to vector<1x1x1xf32>
    %56 = vector.extract %55[0, 0, 0] : f32 from vector<1x1x1xf32>
    %57 = arith.addf %0, %1 : f32
    %cst_21 = arith.constant 5.000000e-01 : f32
    %58 = arith.mulf %cst_21, %57 : f32
    %59 = arith.subf %58, %2 : f32
    %60 = arith.addf %56, %59 : f32
    %61 = vector.extract_strided_slice %44 {offsets = [1, 0], sizes = [1, 128], strides = [1, 1]} : vector<8x128xf32> to vector<1x128xf32>
    %62 = arith.mulf %61, %26 : vector<1x128xf32>
    %63 = vector.shape_cast %62 : vector<1x128xf32> to vector<1x1x128xf32>
    %cst_22 = arith.constant dense<0.000000e+00> : vector<1xf32>
    %64 = vector.multi_reduction <add>, %63, %cst_22 [1, 2] : vector<1x1x128xf32> to vector<1xf32>
    %65 = vector.shape_cast %64 : vector<1xf32> to vector<1x1x1xf32>
    %66 = vector.extract %65[0, 0, 0] : f32 from vector<1x1x1xf32>
    %67 = vector.extract_strided_slice %42 {offsets = [1, 0], sizes = [1, 64], strides = [1, 1]} : vector<8x64xf32> to vector<1x64xf32>
    %68 = arith.mulf %67, %67 : vector<1x64xf32>
    %69 = vector.shape_cast %68 : vector<1x64xf32> to vector<1x1x64xf32>
    %cst_23 = arith.constant dense<0.000000e+00> : vector<1xf32>
    %70 = vector.multi_reduction <add>, %69, %cst_23 [1, 2] : vector<1x1x64xf32> to vector<1xf32>
    %71 = vector.shape_cast %70 : vector<1xf32> to vector<1x1x1xf32>
    %72 = vector.extract %71[0, 0, 0] : f32 from vector<1x1x1xf32>
    %cst_24 = arith.constant 1.500000e+00 : f32
    %73 = arith.mulf %cst_24, %72 : f32
    %74 = arith.cmpf ogt, %66, %60 : f32
    %cst_25 = arith.constant 0.000000e+00 : f32
    %75 = arith.cmpf ogt, %73, %cst_25 : f32
    %76 = arith.andi %74, %75 : i1
    %77 = arith.subf %60, %66 : f32
    %cst_26 = arith.constant 9.99999996E-13 : f32
    %78 = arith.maximumf %73, %cst_26 : f32
    %79 = arith.divf %77, %78 : f32
    %cst_27 = arith.constant 0.000000e+00 : f32
    %80 = arith.select %76, %79, %cst_27 : f32
    %81 = vector.broadcast %45 : vector<1x128xf32> to vector<8x128xf32>
    %82 = arith.addf %44, %81 : vector<8x128xf32>
    %83 = arith.mulf %80, %72 : f32
    %84 = vector.broadcast %83 : f32 to vector<1x128xf32>
    %85 = arith.mulf %84, %26 : vector<1x128xf32>
    %86 = vector.broadcast %85 : vector<1x128xf32> to vector<8x128xf32>
    %87 = arith.addf %82, %86 : vector<8x128xf32>
    %c0_28 = arith.constant 0 : index
    %c0_29 = arith.constant 0 : index
    %88 = vector.load %arg5[%c0_28, %c0_29] : memref<8x128xf32, #tpu.memory_space<vmem>>, vector<8x128xf32>
    tpu.vector_store %arg5[%c0_28, %c0_29], %87 {strides = array<i32>} : memref<8x128xf32, #tpu.memory_space<vmem>>, vector<8x128xf32>,
    return
  }
}

</mosaic_0001>

<bundles_post_ra>
// kernel: odefunc_forward.1
= control target key start
LH: loop header
LB: loop body
LE: loop exit
PB: predicated region body
PF: predicated region fallthrough
CT: control target
= control target key end

     0   :  { %10 = vsyncpa [#allocation4], 0  ;;  %s464_s0 = inlined_call_operand.vmem [shape: f32[3], index: 0, kind: input, shape index: {}]   ;;  %s465_s1 = inlined_call_operand.hbm [shape: f32[8,64], index: 1, kind: input, shape index: {}]   ;;  %s466_s2 = inlined_call_operand.vmem [shape: f32[1,64], index: 2, kind: input, shape index: {}]   ;;  %s467_s3 = inlined_call_operand.hbm [shape: f32[64,128], index: 3, kind: input, shape index: {}]   ;;  %s468_s4 = inlined_call_operand.vmem [shape: f32[1,128], index: 4, kind: input, shape index: {}]   ;;  %s469_s5 = inlined_call_operand.vmem [shape: f32[8,128], index: 5, kind: output, shape index: {}]  }
   0x1   :  { %11 = vsyncpa [#allocation3], 0  ;;  %s19_s20 = sshll.u32 %s464_s0, 4  ;;  %s20_s20 = int_to_ptr.vmem [resolvable:$true] %s19_s20 }
   0x2   :  { %12 = vsyncpa [#allocation7], 0  ;;  %s312_s21 = scalar_lea.vmem %s20_s20, 16  ;;  %p317_p1 = scmp.lt.s32.totalorder %s20_s20, %s20_s20 }
   0x3   :  { %p313_p0 = scmp.ne.s32.totalorder %s20_s20, %s312_s21  ;;  %p318_p2 = scmp.lt.s32.totalorder %s312_s21, %s312_s21 }
   0x5   :  { %p319_p3 = por %p318_p2, %p317_p1 }
   0x7   :  { %p320_p4 = pnand %p319_p3, %p313_p0 }
   0x9   :  { %323 = shalt.err (!%p320_p4)
}
   0xa   :  { %s370_s22 = smov [#allocation2]   ;;  %s371_s23 = smov [#allocation5]  }
   0xb   :  { %22 = dma.vmem_to_smem %s20_s20, 16, %s370_s22, [#allocation4]  }
   0xc   :  { %s29_s24 = sshll.u32 %s371_s23, 4  ;;  %s372_s25 = smov [#allocation6]   ;;  %s30_s24 = int_to_ptr.vmem [resolvable:$true] %s29_s24 }
   0xd   :  { %s40_s26 = sshll.u32 %s372_s25, 4  ;;  %s332_s27 = scalar_lea.vmem %s30_s24, 128  ;;  %s41_s26 = int_to_ptr.vmem [resolvable:$true] %s40_s26 }
   0xe   :  { %p333_p5 = scmp.ne.s32.totalorder %s30_s24, %s332_s27  ;;  %p337_p6 = scmp.lt.s32.totalorder %s30_s24, %s30_s24 }
   0xf   :  { %p338_p7 = scmp.lt.s32.totalorder %s332_s27, %s332_s27 }
  0x11   :  { %p339_p8 = por %p338_p7, %p337_p6 }
  0x13   :  { %p340_p9 = pnand %p339_p8, %p333_p5 }
  0x15   :  { %343 = shalt.err (!%p340_p9)
}
  0x16   :  { %32 = dma.hbm_to_vmem [thread:$0]  %s465_s1, 128, %s30_s24, [#allocation3]  }
  0x17   :  { %s352_s29 = scalar_lea.vmem %s41_s26, 1024  ;;  %p357_p11 = scmp.lt.s32.totalorder %s41_s26, %s41_s26 }
  0x18   :  { %p353_p10 = scmp.ne.s32.totalorder %s41_s26, %s352_s29  ;;  %p358_p12 = scmp.lt.s32.totalorder %s352_s29, %s352_s29 }
  0x1a   :  { %p359_p13 = por %p358_p12, %p357_p11 }
  0x1c   :  { %p360_p0 = pnand %p359_p13, %p353_p10 }
  0x1e   :  { %363 = shalt.err (!%p360_p0)
}
  0x1f   :  { %s373_s30 = smov 128   ;;  %s374_s6 = smov 8  }
  0x20   :  { %46 = dma.hbm_to_vmem [thread:$0]  %s467_s3, 1024, %s41_s26, [#allocation7], %s373_s30, %s373_s30, %s374_s6  }
  0x21   :  { %364 = dma.done.wait [#allocation4], 16  }
  0x22   :  { %365 = vsyncadd [#allocation4], 4294967280 }
  0x23   :  { %366 = dma.done.wait [#allocation3], 128  }
  0x24   :  { %367 = vsyncadd [#allocation3], 4294967168 }
  0x25   :  { %368 = dma.done.wait [#allocation7], 1024  }
  0x26   :  { %369 = vsyncadd [#allocation7], 4294966272 }
  0x27   :  { %58 = sfence }
  0x28   :  { %v102_v0 = vld [vmem:[#allocation6 + $0x38] sm:$0xff]  ;;  %v375_v1 = vmov 0.0   ;;  %v101_v2 = vld [vmem:[#allocation6 + $0x30] sm:$0xff]  ;;  %vm376_vm0 = vmmov 0   ;;  %s419_s1 = sld [smem:[#allocation2]]  ;;  %v100_v3 = vld [vmem:[#allocation6 + $0x28] sm:$0xff]  ;;  %v76_v21 = vlaneseq }
  0x29   :  { %273 = vmatprep.subr.mxu0 %v375_v1  ;;  %289 = vmatprep.mubr.msk.f32.mxu0 %vm376_vm0, %v375_v1  ;;  %s421_s3 = sld [smem:[#allocation2 + $0x1]]  ;;  %v99_v4 = vld [vmem:[#allocation6 + $0x20] sm:$0xff]  ;;  %v62_v5 = vld [vmem:[#allocation5] sm:$0x1]  ;;  %v65_v6 = vld [vmem:[#allocation5 + $0x1] sm:$0x1] }
  0x2a   :  { %274 = vmatpush3.msra.mxu0 %v102_v0  ;;  %s424_s9 = sld [smem:[#allocation2 + $0x2]]  ;;  %v98_v7 = vld [vmem:[#allocation6 + $0x18] sm:$0xff]  ;;  %v97_v12 = vld [vmem:[#allocation6 + $0x10] sm:$0xff]  ;;  %v96_v16 = vld [vmem:[#allocation6 + $0x8] sm:$0xff]  ;;  %v77_v23 = vand.u32 127, %v76_v21  ;;  %v438_v24 = vshrl.u32 %v76_v21, 7 }
  0x2b   :  { %275 = vmatprep.subr.mxu0 %v375_v1  ;;  %v69_v9 = vld [vmem:[#allocation5 + $0x2] sm:$0x1]  ;;  %v73_v18 = vld [vmem:[%s466_s2] sm:$0x1]  ;;  %v95_v19 = vld [vmem:[#allocation6] sm:$0xff]  ;;  %vm103_vm5 = vcmask 523264  }
  0x2c   :  { %276 = vmatpush3.msra.mxu0 %v101_v2  ;;  %vm85_vm1 = vcmp.eq.s32.totalorder %v438_v24, 1  ;;  %vm86_vm2 = vcmp.lt.s32.totalorder %v77_v23, 3  ;;  %vm84_vm4 = vcmp.eq.s32.totalorder %v438_v24, 0  ;;  %v92_v26 = vsub.s32 0, %v438_v24  ;;  %v177_v41 = vld [vmem:[%s468_s4] sm:$0x1] }
  0x2d   :  { %277 = vmatprep.subr.mxu0 %v375_v1  ;;  %vm87_vm3 = vmand %vm85_vm1, %vm86_vm2  ;;  %vm218_vm6 = vcmask 516096   ;;  %vm79_vm7 = vcmp.lt.s32.totalorder %v77_v23, 2  ;;  %vm78_vm8 = vcmp.eq.s32.totalorder %v77_v23, 2  ;;  %vm185_vm9 = vcmask 1040384   ;;  %s377_s21 = smov 1e-12  }
  0x2e   :  { %278 = vmatpush3.msra.mxu0 %v100_v3  ;;  %v63_v8 = vstv %s419_s1  ;;  %v88_v25 = vsel %vm87_vm3, 1.0, %v375_v1  ;;  %v80_v34 = vsel %vm79_vm7, -0.5, %v375_v1 }
  0x2f   :  { %279 = vmatprep.subr.mxu0 %v375_v1  ;;  %v64_v10 = vmul.f32 %v63_v8, %v62_v5  ;;  %v66_v11 = vstv %s421_s3  ;;  %v89_v28 = vsel %vm84_vm4, 1.0, %v88_v25  ;;  %v81_v38 = vsel %vm78_vm8, 1.0, %v80_v34  ;;  %s196_s4 = sadd.f32 %s421_s3, %s419_s1 }
  0x30   :  { %280 = vmatpush3.msra.mxu0 %v99_v4  ;;  %v67_v13 = vmul.f32 %v66_v11, %v65_v6  ;;  %v70_v14 = vstv %s424_s9  ;;  %v183_v40 = vsub.f32 0.0, %v81_v38 }
  0x31   :  { %281 = vmatprep.subr.mxu0 %v375_v1  ;;  %v71_v15 = vmul.f32 %v70_v14, %v69_v9  ;;  %s197_s13 = smul.f32 0.5, %s196_s4 }
  0x32   :  { %282 = vmatpush3.msra.mxu0 %v98_v7  ;;  %v68_v17 = vadd.f32 %v67_v13, %v64_v10  ;;  %v245_v7 = vrot.slane %v177_v41, %v92_v26 }
  0x33   :  { %283 = vmatprep.subr.mxu0 %v375_v1  ;;  %s198_s14 = ssub.f32 %s197_s13, %s424_s9 }
  0x34   :  { %284 = vmatpush3.msra.mxu0 %v97_v12  ;;  %v72_v20 = vadd.f32 %v71_v15, %v68_v17 }
  0x35   :  { %285 = vmatprep.subr.mxu0 %v375_v1 }
  0x36   :  { %286 = vmatpush3.msra.mxu0 %v96_v16  ;;  %v74_v22 = vadd.f32 %v73_v18, %v72_v20 }
  0x37   :  { %287 = vmatprep.subr.mxu0 %v375_v1 }
  0x38   :  { %288 = vmatpush3.msra.mxu0 %v95_v19  ;;  %308 = vtanh.f32 %v74_v22 }
  0x45   :  { %v309_v27 = vpop.eup %308 }
  0x46   :  { %v93_v29 = vrot.slane %v309_v27, %v92_v26 }
  0x48   :  { %v94_v30 = vmul.f32 %v93_v29, %v89_v28 }
  0x4a   :  { %290 = vmatmul.mubr.msk.f32.vlgmr.msra.gmra.mxu0 %vm103_vm5, %v94_v30  ;;  %v214_v31 = vmul.f32 %v94_v30, %v94_v30 }
  0x4c   :  { %v216_v32 = vrot.slane %v214_v31, 1 }
  0x4e   :  { %v219_v33 = vsel %vm218_vm6, %v216_v32, 0.0 }
  0x4f   :  { %220 = vadd.xlane.f32.xlu1 %v219_v33 }
  0xd8   :  { %v221_v48 = vpop.xlane.xlu1 %220 }
  0xd9   :  { %v222_v49 = vrot.slane %v221_v48, 4 }
  0xdb   :  { %v223_v50 = vadd.f32 %v222_v49, %v221_v48 }
  0xdd   :  { %v224_v54 = vrot.slane %v223_v50, 2 }
  0xdf   :  { %v225_v60 = vadd.f32 %v224_v54, %v223_v50 }
  0xe1   :  { %v226_v1 = vrot.slane %v225_v60, 1 }
  0xe3   :  { %v227_v4 = vadd.f32 %v226_v1, %v225_v60 }
 0x10a   :  { %v447_v35 = vpop.f32.mrf.mxu0 }
 0x10b   :  { %v179_v36 = vrot.slane %v447_v35, 1  ;;  %v200_v43 = vmul.f32 %v447_v35, %v81_v38  ;;  %v247_v9 = vadd.f32 %v245_v7, %v447_v35 }
 0x10c   :  { %v291_v37 = vpop.f32.mrf.mxu0 }
 0x10d   :  { %v181_v39 = vsub.f32 %v447_v35, %v179_v36  ;;  %v202_v46 = vrot.slane %v200_v43, 1 }
 0x10f   :  { %v182_v42 = vadd.f32 %v181_v39, %v177_v41  ;;  %v204_v47 = vsel %vm185_vm9, %v202_v46, 0.0 }
 0x111   :  { %v184_v44 = vmul.f32 %v183_v40, %v182_v42 }
 0x113   :  { %v186_v45 = vsel %vm185_vm9, %v184_v44, 0.0 }
 0x114   :  { %187 = vadd.xlane.f32.xlu0 %v186_v45 }
 0x118   :  { %205 = vadd.xlane.f32.xlu0 %v204_v47 }
 0x19d   :  { %v188_v51 = vpop.xlane.xlu0 %187 }
 0x19e   :  { %v189_v52 = vrot.slane %v188_v51, 4 }
 0x1a0   :  { %v190_v53 = vadd.f32 %v189_v52, %v188_v51 }
 0x1a1   :  { %v206_v55 = vpop.xlane.xlu0 %205 }
 0x1a2   :  { %v191_v56 = vrot.slane %v190_v53, 2  ;;  %v207_v57 = vrot.slane %v206_v55, 4 }
 0x1a4   :  { %v208_v58 = vadd.f32 %v207_v57, %v206_v55  ;;  %v192_v59 = vadd.f32 %v191_v56, %v190_v53 }
 0x1a6   :  { %v209_v61 = vrot.slane %v208_v58, 2  ;;  %v193_v62 = vrot.slane %v192_v59, 1 }
 0x1a8   :  { %v210_v63 = vadd.f32 %v209_v61, %v208_v58  ;;  %v194_v0 = vadd.f32 %v193_v62, %v192_v59 }
 0x1aa   :  { %292 = vpush %v194_v0  ;;  %v211_v2 = vrot.slane %v210_v63, 1 }
 0x1ac   :  { %v212_v3 = vadd.f32 %v211_v2, %v210_v63 }
 0x1ae   :  { %294 = vpush %v212_v3 }
 0x1af   :  { %296 = vpush %v227_v4 }
 0x1db   :  { %s293_s15 = spop %292 }
 0x1dc   :  { %s199_s16 = sadd.f32 %s293_s15, %s198_s14 }
 0x1df   :  { %s295_s17 = spop %294 }
 0x1e0   :  { %p230_p1 = scmp.gt.f32.partialorder %s295_s17, %s199_s16  ;;  %s234_s18 = ssub.f32 %s199_s16, %s295_s17 }
 0x1e1   :  { %s297_s19 = spop %296 }
 0x1e2   :  { %s229_s20 = smul.f32 1.5, %s297_s19 }
 0x1e4   :  { %p231_p2 = scmp.gt.f32.partialorder %s229_s20, 0.0  ;;  %s235_s22 = smax.f32 %s377_s21, %s229_s20 }
 0x1e5   :  { %v236_v5 = vstv %s235_s22 }
 0x1e6   :  { %310 = vrcp.f32 %v236_v5  ;;  %p232_p3 = pnand %p231_p2, %p230_p1 }
 0x1f3   :  { %v311_v6 = vpop.eup %310 }
 0x1f4   :  { %298 = vpush %v311_v6 }
 0x225   :  { %s299_s23 = spop %298 }
 0x226   :  { %s239_s24 = smul.f32 %s299_s23, %s234_s18 }
 0x228   :  { %s471_s24 = smov (%p232_p3, %s239_s24), 0.0 }
 0x229   :  { %s248_s25 = smul.f32 %s297_s19, %s471_s24 }
 0x22b   :  { %v249_v8 = vstv %s248_s25 }
 0x22c   :  { %v250_v10 = vmul.f32 %v249_v8, %v81_v38 }
 0x22e   :  { %v251_v11 = vadd.f32 %v250_v10, %v247_v9 }
 0x230   :  { %252 = vst [vmem:[%s469_s5] sm:$0xff] %v251_v11 }
 0x231   :  { %257 = vsyncpa [#allocation3], 1 }
 0x232   :  { %258 = vsyncpa [#allocation7], 1 }
 0x233   :  { %259 = vsyncpa [#allocation4], 1 }

</bundles_post_ra>
